<compile_context>
chip_gen: v5e
topology: v5e:2x2
jax: 0.10.0
libtpu: 0.0.40
codegen_flags: <defaults>
</compile_context>

<pallas_src>
import jax
import jax.numpy as jnp
import numpy as np
from jax.experimental import pallas as pl
from jax.experimental.pallas import tpu as pltpu

LANE = 128      # vreg lane width: last dim padded to a multiple of this
SUBLANE = 8     # vreg sublane width: batch tile rounded to a multiple of this


def _round_up(n, m):
    return ((n + m - 1) // m) * m


def autoencoder_kernel(x_ref,
                       w1_ref, b1_ref,
                       w2_ref, b2_ref,
                       w3_ref, b3_ref,
                       w4_ref, b4_ref,
                       w5_ref, b5_ref,
                       o_ref):
    compute_dtype = w1_ref.dtype

    def layer(a, w_ref, b_ref, relu):
        # MXU matmul in the storage dtype (f32 or bf16), f32 accumulation.
        y = jnp.dot(a.astype(compute_dtype), w_ref[...],
                    preferred_element_type=jnp.float32)
        y = y + b_ref[...].astype(jnp.float32)
        return jnp.maximum(y, 0.0) if relu else y

    a = x_ref[...]
    # Encoder
    a = layer(a, w1_ref, b1_ref, relu=True)   # (B, in_p)  -> (B, hid_p)
    a = layer(a, w2_ref, b2_ref, relu=True)   # (B, hid_p) -> (B, lat_p)
    # Decoder
    a = layer(a, w3_ref, b3_ref, relu=True)   # (B, lat_p) -> (B, hid_p)
    a = layer(a, w4_ref, b4_ref, relu=True)   # (B, hid_p) -> (B, hid_p)
    a = layer(a, w5_ref, b5_ref, relu=False)  # (B, hid_p) -> (B, in_p)

    o_ref[...] = a.astype(o_ref.dtype)


def autoencoder_forward(x, params, *, block_b=256, compute_dtype=jnp.float32):
    """x: (B, input_dim). params: dict of (in,out) weights + (1,out) biases.

    Pads feature dims to multiples of 128 and the batch to a multiple of the
    batch tile; weights/biases stay VMEM-resident across grid steps.
    """
    B, input_dim = x.shape
    hidden_dim = params["w1"].shape[1]
    latent_dim = params["w2"].shape[1]

    in_p = _round_up(input_dim, LANE)
    hid_p = _round_up(hidden_dim, LANE)
    lat_p = _round_up(latent_dim, LANE)

    def pad2(a, rows, cols):
        return jnp.pad(a, ((0, rows - a.shape[0]),
                           (0, cols - a.shape[1]))).astype(compute_dtype)

    # Zero-padded, (in, out)-layout weights so y = x @ W + b == nn.Linear(x).
    # Zero padding keeps padded lanes at 0 through ReLU.
    w1 = pad2(params["w1"], in_p, hid_p);  b1 = pad2(params["b1"], 1, hid_p)
    w2 = pad2(params["w2"], hid_p, lat_p); b2 = pad2(params["b2"], 1, lat_p)
    w3 = pad2(params["w3"], lat_p, hid_p); b3 = pad2(params["b3"], 1, hid_p)
    w4 = pad2(params["w4"], hid_p, hid_p); b4 = pad2(params["b4"], 1, hid_p)
    w5 = pad2(params["w5"], hid_p, in_p);  b5 = pad2(params["b5"], 1, in_p)

    # Batch tile: as large as requested, but no bigger than the (sublane-rounded)
    # batch itself; always a multiple of 8 sublanes.
    tile_b = min(_round_up(block_b, SUBLANE), _round_up(B, SUBLANE))
    b_pad = _round_up(B, tile_b)
    grid = (b_pad // tile_b,)

    x_p = jnp.pad(x, ((0, b_pad - B), (0, in_p - input_dim))).astype(compute_dtype)

    def resident(a):  # whole array, fetched once, stays in VMEM for all grid steps
        return pl.BlockSpec(a.shape, lambda i: (0, 0))

    itemsize = jnp.dtype(compute_dtype).itemsize
    weight_elems = (w1.size + b1.size + w2.size + b2.size + w3.size + b3.size
                    + w4.size + b4.size + w5.size + b5.size)
    flops = 2 * b_pad * (in_p * hid_p + hid_p * lat_p + lat_p * hid_p
                         + hid_p * hid_p + hid_p * in_p)
    bytes_accessed = (b_pad * in_p * itemsize            # x in
                      + weight_elems * itemsize          # resident params
                      + b_pad * in_p * jnp.dtype(x.dtype).itemsize)  # out

    out = pl.pallas_call(
        autoencoder_kernel,
        out_shape=jax.ShapeDtypeStruct((b_pad, in_p), x.dtype),
        grid=grid,
        in_specs=[pl.BlockSpec((tile_b, in_p), lambda i: (i, 0)),
                  resident(w1), resident(b1),
                  resident(w2), resident(b2),
                  resident(w3), resident(b3),
                  resident(w4), resident(b4),
                  resident(w5), resident(b5)],
        out_specs=pl.BlockSpec((tile_b, in_p), lambda i: (i, 0)),
        compiler_params=pltpu.CompilerParams(
            dimension_semantics=("parallel",)),
        cost_estimate=pl.CostEstimate(flops=int(flops),
                                      transcendentals=0,
                                      bytes_accessed=int(bytes_accessed)),
    )(x_p, w1, b1, w2, b2, w3, b3, w4, b4, w5, b5)

    return out[:B, :input_dim].astype(x.dtype)


def init_params(key, input_dim, hidden_dim, latent_dim, dtype=jnp.float32):
    """Deterministic init mimicking torch.nn.Linear default
    (U[-1/sqrt(fan_in), +1/sqrt(fan_in)]). Weights stored (in_features, out_features)."""
    def linear(k, fan_in, fan_out):
        kw, kb = jax.random.split(k)
        bound = 1.0 / np.sqrt(fan_in)
        w = jax.random.uniform(kw, (fan_in, fan_out), dtype, -bound, bound)
        b = jax.random.uniform(kb, (1, fan_out), dtype, -bound, bound)
        return w, b

    keys = jax.random.split(key, 5)
    w1, b1 = linear(keys[0], input_dim, hidden_dim)
    w2, b2 = linear(keys[1], hidden_dim, latent_dim)
    w3, b3 = linear(keys[2], latent_dim, hidden_dim)
    w4, b4 = linear(keys[3], hidden_dim, hidden_dim)
    w5, b5 = linear(keys[4], hidden_dim, input_dim)
    return dict(w1=w1, b1=b1, w2=w2, b2=b2, w3=w3, b3=b3,
                w4=w4, b4=b4, w5=w5, b5=b5)


def autoencoder_ref(x, p):
    """Pure-JAX reference for correctness checking."""
    h = jax.nn.relu(x @ p["w1"] + p["b1"])
    z = jax.nn.relu(h @ p["w2"] + p["b2"])
    d = jax.nn.relu(z @ p["w3"] + p["b3"])
    d = jax.nn.relu(d @ p["w4"] + p["b4"])
    return d @ p["w5"] + p["b5"]


if __name__ == "__main__":
    input_dim, hidden_dim, latent_dim = 64, 32, 16

    key = jax.random.PRNGKey(0)
    kx, kp, kx2 = jax.random.split(key, 3)
    params = init_params(kp, input_dim, hidden_dim, latent_dim)

    fwd = jax.jit(autoencoder_forward, static_argnames=("block_b", "compute_dtype"))

    # 1) Small batch (shapes implied by the module spec), f32, tight tolerance.
    x_small = jax.random.normal(kx, (8, input_dim), jnp.float32)
    out_small = jax.block_until_ready(fwd(x_small, params))
    ref_small = autoencoder_ref(x_small, params)
    np.testing.assert_allclose(np.asarray(out_small), np.asarray(ref_small),
                               rtol=1e-4, atol=1e-4)

    # 2) Larger, tile-unaligned batch exercising the pipelined batch grid
    #    (multiple grid steps, resident weights, padded+sliced output).
    x_big = jax.random.normal(kx2, (1064, input_dim), jnp.float32)
    out_big = jax.block_until_ready(fwd(x_big, params, block_b=256))
    ref_big = autoencoder_ref(x_big, params)
    np.testing.assert_allclose(np.asarray(out_big), np.asarray(ref_big),
                               rtol=1e-4, atol=1e-4)

    # 3) bf16 weights/activations with f32 accumulation (v6e/v7x fast path);
    #    loose tolerance because parameters and activations are quantized.
    out_bf16 = jax.block_until_ready(
        fwd(x_big, params, block_b=256, compute_dtype=jnp.bfloat16))
    np.testing.assert_allclose(np.asarray(out_bf16), np.asarray(ref_big),
                               rtol=1e-1, atol=1e-1)

    print("KERNEL_OK")
</pallas_src>

<mosaic_0001>
module attributes {stable_mosaic.version = 11 : i64} {
  func.func @autoencoder_kernel(%arg0: i32, %arg1: memref<8x128xf32, #tpu.memory_space<vmem>>, %arg2: memref<128x128xf32, #tpu.memory_space<vmem>>, %arg3: memref<1x128xf32, #tpu.memory_space<vmem>>, %arg4: memref<128x128xf32, #tpu.memory_space<vmem>>, %arg5: memref<1x128xf32, #tpu.memory_space<vmem>>, %arg6: memref<128x128xf32, #tpu.memory_space<vmem>>, %arg7: memref<1x128xf32, #tpu.memory_space<vmem>>, %arg8: memref<128x128xf32, #tpu.memory_space<vmem>>, %arg9: memref<1x128xf32, #tpu.memory_space<vmem>>, %arg10: memref<128x128xf32, #tpu.memory_space<vmem>>, %arg11: memref<1x128xf32, #tpu.memory_space<vmem>>, %arg12: memref<8x128xf32, #tpu.memory_space<vmem>>) attributes {dimension_semantics = [#tpu.dimension_semantics<parallel>], iteration_bounds = array<i64: 1>, scalar_prefetch = 0 : i64, scratch_operands = 0 : i64, tpu.core_type = #tpu.core_type<tc>, window_params = [{transform_indices = @transform_0, window_bounds = array<i64: 8, 128>}, {pipeline_mode = #tpu.pipeline_mode<synchronous>, transform_indices = @transform_1, window_bounds = array<i64: 128, 128>}, {pipeline_mode = #tpu.pipeline_mode<synchronous>, transform_indices = @transform_2, window_bounds = array<i64: 1, 128>}, {pipeline_mode = #tpu.pipeline_mode<synchronous>, transform_indices = @transform_3, window_bounds = array<i64: 128, 128>}, {pipeline_mode = #tpu.pipeline_mode<synchronous>, transform_indices = @transform_4, window_bounds = array<i64: 1, 128>}, {pipeline_mode = #tpu.pipeline_mode<synchronous>, transform_indices = @transform_5, window_bounds = array<i64: 128, 128>}, {pipeline_mode = #tpu.pipeline_mode<synchronous>, transform_indices = @transform_6, window_bounds = array<i64: 1, 128>}, {pipeline_mode = #tpu.pipeline_mode<synchronous>, transform_indices = @transform_7, window_bounds = array<i64: 128, 128>}, {pipeline_mode = #tpu.pipeline_mode<synchronous>, transform_indices = @transform_8, window_bounds = array<i64: 1, 128>}, {pipeline_mode = #tpu.pipeline_mode<synchronous>, transform_indices = @transform_9, window_bounds = array<i64: 128, 128>}, {pipeline_mode = #tpu.pipeline_mode<synchronous>, transform_indices = @transform_10, window_bounds = array<i64: 1, 128>}, {transform_indices = @transform_11, window_bounds = array<i64: 8, 128>}]} {
    %c0 = arith.constant 0 : index
    %c0_0 = arith.constant 0 : index
    %0 = vector.load %arg1[%c0, %c0_0] : memref<8x128xf32, #tpu.memory_space<vmem>>, vector<8x128xf32>
    %c0_1 = arith.constant 0 : index
    %c0_2 = arith.constant 0 : index
    %1 = vector.load %arg2[%c0_1, %c0_2] : memref<128x128xf32, #tpu.memory_space<vmem>>, vector<128x128xf32>
    %cst = arith.constant dense<0.000000e+00> : vector<8x128xf32>
    %2 = tpu.matmul %0, %1, %cst {dimension_numbers = #tpu.dot_dimension_numbers<[1], [0], [0], [1], [0, 0, 1, 1], [], []>} : vector<8x128xf32>, vector<128x128xf32>, vector<8x128xf32> -> vector<8x128xf32>
    %c0_3 = arith.constant 0 : index
    %c0_4 = arith.constant 0 : index
    %3 = vector.load %arg3[%c0_3, %c0_4] : memref<1x128xf32, #tpu.memory_space<vmem>>, vector<1x128xf32>
    %4 = vector.broadcast %3 : vector<1x128xf32> to vector<8x128xf32>
    %5 = arith.addf %2, %4 : vector<8x128xf32>
    %cst_5 = arith.constant 0.000000e+00 : f32
    %6 = vector.broadcast %cst_5 : f32 to vector<8x128xf32>
    %7 = arith.maximumf %5, %6 : vector<8x128xf32>
    %c0_6 = arith.constant 0 : index
    %c0_7 = arith.constant 0 : index
    %8 = vector.load %arg4[%c0_6, %c0_7] : memref<128x128xf32, #tpu.memory_space<vmem>>, vector<128x128xf32>
    %cst_8 = arith.constant dense<0.000000e+00> : vector<8x128xf32>
    %9 = tpu.matmul %7, %8, %cst_8 {dimension_numbers = #tpu.dot_dimension_numbers<[1], [0], [0], [1], [0, 0, 1, 1], [], []>} : vector<8x128xf32>, vector<128x128xf32>, vector<8x128xf32> -> vector<8x128xf32>
    %c0_9 = arith.constant 0 : index
    %c0_10 = arith.constant 0 : index
    %10 = vector.load %arg5[%c0_9, %c0_10] : memref<1x128xf32, #tpu.memory_space<vmem>>, vector<1x128xf32>
    %11 = vector.broadcast %10 : vector<1x128xf32> to vector<8x128xf32>
    %12 = arith.addf %9, %11 : vector<8x128xf32>
    %cst_11 = arith.constant 0.000000e+00 : f32
    %13 = vector.broadcast %cst_11 : f32 to vector<8x128xf32>
    %14 = arith.maximumf %12, %13 : vector<8x128xf32>
    %c0_12 = arith.constant 0 : index
    %c0_13 = arith.constant 0 : index
    %15 = vector.load %arg6[%c0_12, %c0_13] : memref<128x128xf32, #tpu.memory_space<vmem>>, vector<128x128xf32>
    %cst_14 = arith.constant dense<0.000000e+00> : vector<8x128xf32>
    %16 = tpu.matmul %14, %15, %cst_14 {dimension_numbers = #tpu.dot_dimension_numbers<[1], [0], [0], [1], [0, 0, 1, 1], [], []>} : vector<8x128xf32>, vector<128x128xf32>, vector<8x128xf32> -> vector<8x128xf32>
    %c0_15 = arith.constant 0 : index
    %c0_16 = arith.constant 0 : index
    %17 = vector.load %arg7[%c0_15, %c0_16] : memref<1x128xf32, #tpu.memory_space<vmem>>, vector<1x128xf32>
    %18 = vector.broadcast %17 : vector<1x128xf32> to vector<8x128xf32>
    %19 = arith.addf %16, %18 : vector<8x128xf32>
    %cst_17 = arith.constant 0.000000e+00 : f32
    %20 = vector.broadcast %cst_17 : f32 to vector<8x128xf32>
    %21 = arith.maximumf %19, %20 : vector<8x128xf32>
    %c0_18 = arith.constant 0 : index
    %c0_19 = arith.constant 0 : index
    %22 = vector.load %arg8[%c0_18, %c0_19] : memref<128x128xf32, #tpu.memory_space<vmem>>, vector<128x128xf32>
    %cst_20 = arith.constant dense<0.000000e+00> : vector<8x128xf32>
    %23 = tpu.matmul %21, %22, %cst_20 {dimension_numbers = #tpu.dot_dimension_numbers<[1], [0], [0], [1], [0, 0, 1, 1], [], []>} : vector<8x128xf32>, vector<128x128xf32>, vector<8x128xf32> -> vector<8x128xf32>
    %c0_21 = arith.constant 0 : index
    %c0_22 = arith.constant 0 : index
    %24 = vector.load %arg9[%c0_21, %c0_22] : memref<1x128xf32, #tpu.memory_space<vmem>>, vector<1x128xf32>
    %25 = vector.broadcast %24 : vector<1x128xf32> to vector<8x128xf32>
    %26 = arith.addf %23, %25 : vector<8x128xf32>
    %cst_23 = arith.constant 0.000000e+00 : f32
    %27 = vector.broadcast %cst_23 : f32 to vector<8x128xf32>
    %28 = arith.maximumf %26, %27 : vector<8x128xf32>
    %c0_24 = arith.constant 0 : index
    %c0_25 = arith.constant 0 : index
    %29 = vector.load %arg10[%c0_24, %c0_25] : memref<128x128xf32, #tpu.memory_space<vmem>>, vector<128x128xf32>
    %cst_26 = arith.constant dense<0.000000e+00> : vector<8x128xf32>
    %30 = tpu.matmul %28, %29, %cst_26 {dimension_numbers = #tpu.dot_dimension_numbers<[1], [0], [0], [1], [0, 0, 1, 1], [], []>} : vector<8x128xf32>, vector<128x128xf32>, vector<8x128xf32> -> vector<8x128xf32>
    %c0_27 = arith.constant 0 : index
    %c0_28 = arith.constant 0 : index
    %31 = vector.load %arg11[%c0_27, %c0_28] : memref<1x128xf32, #tpu.memory_space<vmem>>, vector<1x128xf32>
    %32 = vector.broadcast %31 : vector<1x128xf32> to vector<8x128xf32>
    %33 = arith.addf %30, %32 : vector<8x128xf32>
    %c0_29 = arith.constant 0 : index
    %c0_30 = arith.constant 0 : index
    %34 = vector.load %arg12[%c0_29, %c0_30] : memref<8x128xf32, #tpu.memory_space<vmem>>, vector<8x128xf32>
    tpu.vector_store %arg12[%c0_29, %c0_30], %33 {strides = array<i32>} : memref<8x128xf32, #tpu.memory_space<vmem>>, vector<8x128xf32>,
    return
  }
  func.func @transform_0(%arg0: i32) -> (i32, i32) {
    %c0_i32 = arith.constant 0 : i32
    %c0_i32_0 = arith.constant 0 : i32
    return %arg0, %c0_i32 : i32, i32
  }
  func.func @transform_1(%arg0: i32) -> (i32, i32) {
    %c0_i32 = arith.constant 0 : i32
    %c0_i32_0 = arith.constant 0 : i32
    %c0_i32_1 = arith.constant 0 : i32
    return %c0_i32, %c0_i32_0 : i32, i32
  }
  func.func @transform_2(%arg0: i32) -> (i32, i32) {
    %c0_i32 = arith.constant 0 : i32
    %c0_i32_0 = arith.constant 0 : i32
    %c0_i32_1 = arith.constant 0 : i32
    return %c0_i32, %c0_i32_0 : i32, i32
  }
  func.func @transform_3(%arg0: i32) -> (i32, i32) {
    %c0_i32 = arith.constant 0 : i32
    %c0_i32_0 = arith.constant 0 : i32
    %c0_i32_1 = arith.constant 0 : i32
    return %c0_i32, %c0_i32_0 : i32, i32
  }
  func.func @transform_4(%arg0: i32) -> (i32, i32) {
    %c0_i32 = arith.constant 0 : i32
    %c0_i32_0 = arith.constant 0 : i32
    %c0_i32_1 = arith.constant 0 : i32
    return %c0_i32, %c0_i32_0 : i32, i32
  }
  func.func @transform_5(%arg0: i32) -> (i32, i32) {
    %c0_i32 = arith.constant 0 : i32
    %c0_i32_0 = arith.constant 0 : i32
    %c0_i32_1 = arith.constant 0 : i32
    return %c0_i32, %c0_i32_0 : i32, i32
  }
  func.func @transform_6(%arg0: i32) -> (i32, i32) {
    %c0_i32 = arith.constant 0 : i32
    %c0_i32_0 = arith.constant 0 : i32
    %c0_i32_1 = arith.constant 0 : i32
    return %c0_i32, %c0_i32_0 : i32, i32
  }
  func.func @transform_7(%arg0: i32) -> (i32, i32) {
    %c0_i32 = arith.constant 0 : i32
    %c0_i32_0 = arith.constant 0 : i32
    %c0_i32_1 = arith.constant 0 : i32
    return %c0_i32, %c0_i32_0 : i32, i32
  }
  func.func @transform_8(%arg0: i32) -> (i32, i32) {
    %c0_i32 = arith.constant 0 : i32
    %c0_i32_0 = arith.constant 0 : i32
    %c0_i32_1 = arith.constant 0 : i32
    return %c0_i32, %c0_i32_0 : i32, i32
  }
  func.func @transform_9(%arg0: i32) -> (i32, i32) {
    %c0_i32 = arith.constant 0 : i32
    %c0_i32_0 = arith.constant 0 : i32
    %c0_i32_1 = arith.constant 0 : i32
    return %c0_i32, %c0_i32_0 : i32, i32
  }
  func.func @transform_10(%arg0: i32) -> (i32, i32) {
    %c0_i32 = arith.constant 0 : i32
    %c0_i32_0 = arith.constant 0 : i32
    %c0_i32_1 = arith.constant 0 : i32
    return %c0_i32, %c0_i32_0 : i32, i32
  }
  func.func @transform_11(%arg0: i32) -> (i32, i32) {
    %c0_i32 = arith.constant 0 : i32
    %c0_i32_0 = arith.constant 0 : i32
    return %arg0, %c0_i32 : i32, i32
  }
}

</mosaic_0001>

<bundles_post_ra>
// kernel: autoencoder_forward.1
= control target key start
LH: loop header
LB: loop body
LE: loop exit
PB: predicated region body
PF: predicated region fallthrough
CT: control target
= control target key end

     0   :  { %s615_s0 = inlined_call_operand.vmem [shape: f32[8,128], index: 0, kind: input, shape index: {}]   ;;  %s616_s1 = inlined_call_operand.vmem [shape: f32[128,128], index: 1, kind: input, shape index: {}]   ;;  %s617_s2 = inlined_call_operand.vmem [shape: f32[1,128], index: 2, kind: input, shape index: {}]   ;;  %s618_s3 = inlined_call_operand.vmem [shape: f32[128,128], index: 3, kind: input, shape index: {}]   ;;  %s619_s4 = inlined_call_operand.vmem [shape: f32[1,128], index: 4, kind: input, shape index: {}]   ;;  %s620_s5 = inlined_call_operand.vmem [shape: f32[128,128], index: 5, kind: input, shape index: {}]   ;;  %s621_s6 = inlined_call_operand.vmem [shape: f32[1,128], index: 6, kind: input, shape index: {}]   ;;  %s622_s7 = inlined_call_operand.vmem [shape: f32[128,128], index: 7, kind: input, shape index: {}]   ;;  %s623_s8 = inlined_call_operand.vmem [shape: f32[1,128], index: 8, kind: input, shape index: {}]   ;;  %s624_s9 = inlined_call_operand.vmem [shape: f32[128,128], index: 9, kind: input, shape index: {}]   ;;  %s625_s10 = inlined_call_operand.vmem [shape: f32[1,128], index: 10, kind: input, shape index: {}]   ;;  %s626_s11 = inlined_call_operand.hbm [shape: f32[8,128], index: 11, kind: output, shape index: {}]  }
   0x1   :  { %v55_v0 = vld [vmem:[%s616_s1 + $0x78] sm:$0xff]  ;;  %v54_v1 = vld [vmem:[%s616_s1 + $0x70] sm:$0xff]  ;;  %v53_v2 = vld [vmem:[%s616_s1 + $0x68] sm:$0xff] }
   0x2   :  { %60 = vmatpush.msra.mxu0 %v55_v0  ;;  %v52_v3 = vld [vmem:[%s616_s1 + $0x60] sm:$0xff]  ;;  %v96_v4 = vld [vmem:[%s618_s3 + $0x78] sm:$0xff]  ;;  %v95_v6 = vld [vmem:[%s618_s3 + $0x70] sm:$0xff] }
   0x3   :  { %v51_v5 = vld [vmem:[%s616_s1 + $0x58] sm:$0xff]  ;;  %101 = vmatpush.msra.mxu1 %v96_v4  ;;  %v94_v7 = vld [vmem:[%s618_s3 + $0x68] sm:$0xff]  ;;  %v50_v8 = vld [vmem:[%s616_s1 + $0x50] sm:$0xff] }
   0x4   :  { %61 = vmatpush.msra.mxu0 %v54_v1  ;;  %v49_v9 = vld [vmem:[%s616_s1 + $0x48] sm:$0xff]  ;;  %v93_v10 = vld [vmem:[%s618_s3 + $0x60] sm:$0xff]  ;;  %v92_v11 = vld [vmem:[%s618_s3 + $0x58] sm:$0xff] }
   0x5   :  { %102 = vmatpush.msra.mxu1 %v95_v6  ;;  %v48_v12 = vld [vmem:[%s616_s1 + $0x40] sm:$0xff] }
   0x6   :  { %62 = vmatpush.msra.mxu0 %v53_v2 }
   0x7   :  { %103 = vmatpush.msra.mxu1 %v94_v7 }
   0x8   :  { %63 = vmatpush.msra.mxu0 %v52_v3 }
   0x9   :  { %104 = vmatpush.msra.mxu1 %v93_v10 }
   0xa   :  { %64 = vmatpush.msra.mxu0 %v51_v5 }
   0xc   :  { %65 = vmatpush.msra.mxu0 %v50_v8 }
   0xd   :  { %16 = vsyncpa [#allocation3], 0  ;;  %v91_v13 = vld [vmem:[%s618_s3 + $0x50] sm:$0xff]  ;;  %v47_v14 = vld [vmem:[%s616_s1 + $0x38] sm:$0xff]  ;;  %105 = vmatpush.msra.mxu1 %v92_v11  ;;  %s293_s12 = smov [#allocation2]   ;;  %s252_s15 = sshll.u32 %s626_s11, 4  ;;  %s253_s15 = int_to_ptr.hbm [resolvable:$true] %s252_s15 }
   0xe   :  { %66 = vmatpush.msra.mxu0 %v49_v9  ;;  %v90_v15 = vld [vmem:[%s618_s3 + $0x48] sm:$0xff]  ;;  %v46_v16 = vld [vmem:[%s616_s1 + $0x30] sm:$0xff]  ;;  %v89_v17 = vld [vmem:[%s618_s3 + $0x40] sm:$0xff] }
   0xf   :  { %106 = vmatpush.msra.mxu1 %v91_v13  ;;  %v45_v18 = vld [vmem:[%s616_s1 + $0x28] sm:$0xff]  ;;  %v88_v19 = vld [vmem:[%s618_s3 + $0x38] sm:$0xff]  ;;  %v44_v20 = vld [vmem:[%s616_s1 + $0x20] sm:$0xff] }
  0x10   :  { %67 = vmatpush.msra.mxu0 %v48_v12  ;;  %v87_v21 = vld [vmem:[%s618_s3 + $0x30] sm:$0xff]  ;;  %v43_v22 = vld [vmem:[%s616_s1 + $0x18] sm:$0xff]  ;;  %v86_v23 = vld [vmem:[%s618_s3 + $0x28] sm:$0xff] }
  0x11   :  { %107 = vmatpush.msra.mxu1 %v90_v15  ;;  %v42_v24 = vld [vmem:[%s616_s1 + $0x10] sm:$0xff]  ;;  %v85_v25 = vld [vmem:[%s618_s3 + $0x20] sm:$0xff]  ;;  %v41_v26 = vld [vmem:[%s616_s1 + $0x8] sm:$0xff] }
  0x12   :  { %68 = vmatpush.msra.mxu0 %v47_v14  ;;  %v84_v27 = vld [vmem:[%s618_s3 + $0x18] sm:$0xff]  ;;  %v40_v28 = vld [vmem:[%s616_s1] sm:$0xff]  ;;  %v83_v30 = vld [vmem:[%s618_s3 + $0x10] sm:$0xff] }
  0x13   :  { %108 = vmatpush.msra.mxu1 %v89_v17  ;;  %v39_v29 = vld [vmem:[%s615_s0] sm:$0xff]  ;;  %v82_v31 = vld [vmem:[%s618_s3 + $0x8] sm:$0xff]  ;;  %v137_v33 = vld [vmem:[%s620_s5 + $0x78] sm:$0xff] }
  0x14   :  { %69 = vmatpush.msra.mxu0 %v46_v16  ;;  %v81_v32 = vld [vmem:[%s618_s3] sm:$0xff]  ;;  %v136_v34 = vld [vmem:[%s620_s5 + $0x70] sm:$0xff]  ;;  %142 = vmatpush.msra.mxu2 %v137_v33  ;;  %v135_v35 = vld [vmem:[%s620_s5 + $0x68] sm:$0xff]  ;;  %s250_s3 = sshll.u32 %s293_s12, 4  ;;  %s251_s3 = int_to_ptr.vmem [resolvable:$true] %s250_s3 }
  0x15   :  { %109 = vmatpush.msra.mxu1 %v88_v19  ;;  %v134_v36 = vld [vmem:[%s620_s5 + $0x60] sm:$0xff]  ;;  %v133_v37 = vld [vmem:[%s620_s5 + $0x58] sm:$0xff]  ;;  %v132_v38 = vld [vmem:[%s620_s5 + $0x50] sm:$0xff] }
  0x16   :  { %70 = vmatpush.msra.mxu0 %v45_v18  ;;  %143 = vmatpush.msra.mxu2 %v136_v34  ;;  %v131_v39 = vld [vmem:[%s620_s5 + $0x48] sm:$0xff]  ;;  %v130_v40 = vld [vmem:[%s620_s5 + $0x40] sm:$0xff]  ;;  %v129_v41 = vld [vmem:[%s620_s5 + $0x38] sm:$0xff] }
  0x17   :  { %110 = vmatpush.msra.mxu1 %v87_v21  ;;  %v128_v42 = vld [vmem:[%s620_s5 + $0x30] sm:$0xff]  ;;  %v127_v43 = vld [vmem:[%s620_s5 + $0x28] sm:$0xff]  ;;  %v126_v44 = vld [vmem:[%s620_s5 + $0x20] sm:$0xff] }
  0x18   :  { %71 = vmatpush.msra.mxu0 %v44_v20  ;;  %144 = vmatpush.msra.mxu2 %v135_v35  ;;  %v125_v45 = vld [vmem:[%s620_s5 + $0x18] sm:$0xff]  ;;  %v262_v46 = vld [vmem:[%s617_s2] ss:$0 sm:$0xff]  ;;  %v124_v50 = vld [vmem:[%s620_s5 + $0x10] sm:$0xff] }
  0x19   :  { %111 = vmatpush.msra.mxu1 %v86_v23  ;;  %v123_v51 = vld [vmem:[%s620_s5 + $0x8] sm:$0xff]  ;;  %v122_v52 = vld [vmem:[%s620_s5] sm:$0xff]  ;;  %v178_v53 = vld [vmem:[%s622_s7 + $0x78] sm:$0xff] }
  0x1a   :  { %72 = vmatpush.msra.mxu0 %v43_v22  ;;  %145 = vmatpush.msra.mxu2 %v134_v36  ;;  %v177_v54 = vld [vmem:[%s622_s7 + $0x70] sm:$0xff]  ;;  %v176_v55 = vld [vmem:[%s622_s7 + $0x68] sm:$0xff]  ;;  %v175_v56 = vld [vmem:[%s622_s7 + $0x60] sm:$0xff] }
  0x1b   :  { %112 = vmatpush.msra.mxu1 %v85_v25  ;;  %183 = vmatpush.msra.mxu3 %v178_v53  ;;  %v174_v57 = vld [vmem:[%s622_s7 + $0x58] sm:$0xff]  ;;  %v173_v58 = vld [vmem:[%s622_s7 + $0x50] sm:$0xff]  ;;  %v172_v59 = vld [vmem:[%s622_s7 + $0x48] sm:$0xff] }
  0x1c   :  { %73 = vmatpush.msra.mxu0 %v42_v24  ;;  %146 = vmatpush.msra.mxu2 %v133_v37  ;;  %v171_v60 = vld [vmem:[%s622_s7 + $0x40] sm:$0xff]  ;;  %v170_v61 = vld [vmem:[%s622_s7 + $0x38] sm:$0xff]  ;;  %v169_v62 = vld [vmem:[%s622_s7 + $0x30] sm:$0xff] }
  0x1d   :  { %113 = vmatpush.msra.mxu1 %v84_v27  ;;  %184 = vmatpush.msra.mxu3 %v177_v54  ;;  %v168_v63 = vld [vmem:[%s622_s7 + $0x28] sm:$0xff]  ;;  %v167_v0 = vld [vmem:[%s622_s7 + $0x20] sm:$0xff]  ;;  %v166_v1 = vld [vmem:[%s622_s7 + $0x18] sm:$0xff] }
  0x1e   :  { %74 = vmatpush.msra.mxu0 %v41_v26  ;;  %147 = vmatpush.msra.mxu2 %v132_v38  ;;  %v263_v2 = vld [vmem:[%s619_s4] ss:$0 sm:$0xff]  ;;  %v165_v6 = vld [vmem:[%s622_s7 + $0x10] sm:$0xff]  ;;  %v164_v7 = vld [vmem:[%s622_s7 + $0x8] sm:$0xff] }
  0x1f   :  { %114 = vmatpush.msra.mxu1 %v83_v30  ;;  %185 = vmatpush.msra.mxu3 %v176_v55  ;;  %v163_v8 = vld [vmem:[%s622_s7] sm:$0xff]  ;;  %v219_v9 = vld [vmem:[%s624_s9 + $0x78] sm:$0xff]  ;;  %v218_v10 = vld [vmem:[%s624_s9 + $0x70] sm:$0xff] }
  0x20   :  { %75 = vmatpush.msra.mxu0 %v40_v28  ;;  %148 = vmatpush.msra.mxu2 %v131_v39  ;;  %v217_v11 = vld [vmem:[%s624_s9 + $0x68] sm:$0xff]  ;;  %v216_v12 = vld [vmem:[%s624_s9 + $0x60] sm:$0xff]  ;;  %v215_v13 = vld [vmem:[%s624_s9 + $0x58] sm:$0xff] }
  0x21   :  { %76 = vmatmul.f32.vlgmr.msra.gmra.mxu0 %v39_v29  ;;  %115 = vmatpush.msra.mxu1 %v82_v31  ;;  %v214_v14 = vld [vmem:[%s624_s9 + $0x50] sm:$0xff]  ;;  %v213_v15 = vld [vmem:[%s624_s9 + $0x48] sm:$0xff]  ;;  %v212_v16 = vld [vmem:[%s624_s9 + $0x40] sm:$0xff] }
  0x22   :  { %149 = vmatpush.msra.mxu2 %v130_v40  ;;  %186 = vmatpush.msra.mxu3 %v175_v56  ;;  %v211_v17 = vld [vmem:[%s624_s9 + $0x38] sm:$0xff]  ;;  %v210_v18 = vld [vmem:[%s624_s9 + $0x30] sm:$0xff]  ;;  %v209_v19 = vld [vmem:[%s624_s9 + $0x28] sm:$0xff] }
  0x23   :  { %116 = vmatpush.msra.mxu1 %v81_v32  ;;  %224 = vmatpush.msrb.mxu0 %v219_v9  ;;  %v208_v20 = vld [vmem:[%s624_s9 + $0x20] sm:$0xff]  ;;  %v207_v21 = vld [vmem:[%s624_s9 + $0x18] sm:$0xff]  ;;  %v206_v26 = vld [vmem:[%s624_s9 + $0x10] sm:$0xff] }
  0x24   :  { %150 = vmatpush.msra.mxu2 %v129_v41  ;;  %187 = vmatpush.msra.mxu3 %v174_v57  ;;  %v264_v22 = vld [vmem:[%s621_s6] ss:$0 sm:$0xff]  ;;  %v205_v27 = vld [vmem:[%s624_s9 + $0x8] sm:$0xff] }
  0x25   :  { %225 = vmatpush.msrb.mxu0 %v218_v10  ;;  %v204_v28 = vld [vmem:[%s624_s9] sm:$0xff] }
  0x26   :  { %151 = vmatpush.msra.mxu2 %v128_v42  ;;  %188 = vmatpush.msra.mxu3 %v173_v58  ;;  %v265_v29 = vld [vmem:[%s623_s8] ss:$0 sm:$0xff] }
  0x27   :  { %226 = vmatpush.msrb.mxu0 %v217_v11  ;;  %v266_v33 = vld [vmem:[%s625_s10] ss:$0 sm:$0xff] }
  0x28   :  { %152 = vmatpush.msra.mxu2 %v127_v43  ;;  %189 = vmatpush.msra.mxu3 %v172_v59 }
  0x29   :  { %227 = vmatpush.msrb.mxu0 %v216_v12 }
  0x2a   :  { %153 = vmatpush.msra.mxu2 %v126_v44  ;;  %190 = vmatpush.msra.mxu3 %v171_v60 }
  0x2b   :  { %228 = vmatpush.msrb.mxu0 %v215_v13 }
  0x2c   :  { %154 = vmatpush.msra.mxu2 %v125_v45  ;;  %191 = vmatpush.msra.mxu3 %v170_v61 }
  0x2d   :  { %229 = vmatpush.msrb.mxu0 %v214_v14 }
  0x2e   :  { %155 = vmatpush.msra.mxu2 %v124_v50  ;;  %192 = vmatpush.msra.mxu3 %v169_v62 }
  0x2f   :  { %230 = vmatpush.msrb.mxu0 %v213_v15 }
  0x30   :  { %156 = vmatpush.msra.mxu2 %v123_v51  ;;  %193 = vmatpush.msra.mxu3 %v168_v63 }
  0x31   :  { %231 = vmatpush.msrb.mxu0 %v212_v16 }
  0x32   :  { %157 = vmatpush.msra.mxu2 %v122_v52  ;;  %194 = vmatpush.msra.mxu3 %v167_v0 }
  0x33   :  { %232 = vmatpush.msrb.mxu0 %v211_v17 }
  0x34   :  { %195 = vmatpush.msra.mxu3 %v166_v1 }
  0x35   :  { %233 = vmatpush.msrb.mxu0 %v210_v18 }
  0x36   :  { %196 = vmatpush.msra.mxu3 %v165_v6 }
  0x37   :  { %234 = vmatpush.msrb.mxu0 %v209_v19 }
  0x38   :  { %197 = vmatpush.msra.mxu3 %v164_v7 }
  0x39   :  { %235 = vmatpush.msrb.mxu0 %v208_v20 }
  0x3a   :  { %198 = vmatpush.msra.mxu3 %v163_v8 }
  0x3b   :  { %236 = vmatpush.msrb.mxu0 %v207_v21 }
  0x3d   :  { %237 = vmatpush.msrb.mxu0 %v206_v26 }
  0x3f   :  { %238 = vmatpush.msrb.mxu0 %v205_v27 }
  0x41   :  { %239 = vmatpush.msrb.mxu0 %v204_v28 }
  0x9e   :  { %v77_v47 = vpop.f32.mrf.mxu0 }
  0x9f   :  { %v78_v48 = vadd.f32 %v262_v46, %v77_v47 }
  0xa1   :  { %v80_v49 = vmax.f32 %v78_v48, 0.0 }
  0xa3   :  { %117 = vmatmul.f32.vlgmr.msra.gmra.mxu1 %v80_v49 }
 0x120   :  { %v118_v3 = vpop.f32.mrf.mxu1 }
 0x121   :  { %v119_v4 = vadd.f32 %v263_v2, %v118_v3 }
 0x123   :  { %v121_v5 = vmax.f32 %v119_v4, 0.0 }
 0x125   :  { %158 = vmatmul.f32.vlgmr.msra.gmra.mxu2 %v121_v5 }
 0x1a8   :  { %v159_v23 = vpop.f32.mrf.mxu2 }
 0x1a9   :  { %v160_v24 = vadd.f32 %v264_v22, %v159_v23 }
 0x1ab   :  { %v162_v25 = vmax.f32 %v160_v24, 0.0 }
 0x1ad   :  { %199 = vmatmul.f32.vlgmr.msra.gmra.mxu3 %v162_v25 }
 0x230   :  { %v200_v30 = vpop.f32.mrf.mxu3 }
 0x231   :  { %v201_v31 = vadd.f32 %v265_v29, %v200_v30 }
 0x233   :  { %v203_v32 = vmax.f32 %v201_v31, 0.0 }
 0x235   :  { %240 = vmatmul.f32.vlgmr.msrb.gmra.mxu0 %v203_v32 }
 0x2b2   :  { %v241_v34 = vpop.f32.mrf.mxu0 }
 0x2b3   :  { %v242_v35 = vadd.f32 %v266_v33, %v241_v34 }
 0x2b5   :  { %244 = vst [vmem:[#allocation2] sm:$0xff] %v242_v35 }
 0x2b6   :  { %255 = dma.vmem_to_hbm [thread:$0]  %s251_s3, 128, %s253_s15, [#allocation3]  }
 0x2b7   :  { %291 = dma.done.wait [#allocation3], 128  }
 0x2b8   :  { %292 = vsyncadd [#allocation3], 4294967168 }
 0x2b9   :  { %260 = vsyncpa [#allocation3], 1 }

</bundles_post_ra>
